<compile_context>
chip_gen: v5e
topology: v5e:2x2
jax: 0.10.0
libtpu: 0.0.40
codegen_flags: <defaults>
</compile_context>

<pallas_src>
import functools

import jax
import jax.numpy as jnp
from jax import lax
from jax.experimental import pallas as pl
from jax.experimental.pallas import tpu as pltpu


def _dice_partials_kernel(x_ref, lab_ref, out_ref, *, n_classes, softmax,
                          n_valid, tile_n, needs_mask):
    # x_ref:   (C, TILE)  float (native dtype) in VMEM
    # lab_ref: (1, TILE)  int32 class labels in VMEM
    # out_ref: (C, 128)   f32 partials: lane 0 = intersect, 1 = z_sum, 2 = cnt
    x = x_ref[...].astype(jnp.float32)          # cast after the (cheap) DMA
    lab = lab_ref[...]                          # (1, TILE) int32

    if softmax:
        # Softmax over the class (sublane) axis: one max/exp/sum pass and a
        # single approx reciprocal per pixel (EUP), then C cheap multiplies.
        m = jnp.max(x, axis=0, keepdims=True)                 # (1, TILE)
        e = jnp.exp(x - m)                                    # (C, TILE)
        denom = jnp.sum(e, axis=0, keepdims=True)             # (1, TILE)
        x = e * pl.reciprocal(denom, approx=True)

    # One-hot membership without materializing/squaring t: int32 labels vs a
    # per-class int32 iota.
    class_ids = lax.broadcasted_iota(jnp.int32, (n_classes, 1), 0)   # (C, 1)
    onehot = lab == class_ids                                        # (C, TILE)

    if needs_mask:
        # Ragged last tile: the block extends past the array, so the tail
        # columns of BOTH x and the labels are garbage.  Mask activations
        # (z_sum / intersect) and the one-hot (intersect / count).
        col = pl.program_id(1) * tile_n + lax.broadcasted_iota(
            jnp.int32, (1, tile_n), 1)
        valid = col < n_valid                                        # (1, TILE)
        x = jnp.where(valid, x, 0.0)
        onehot = jnp.logical_and(onehot, valid)

    inter = jnp.sum(jnp.where(onehot, x, 0.0), axis=1, keepdims=True)   # (C,1)
    zsum = jnp.sum(x * x, axis=1, keepdims=True)                        # (C,1)
    cnt = jnp.sum(onehot.astype(jnp.float32), axis=1, keepdims=True)    # (C,1)

    # Lane-dense output slab (single unmasked full-block store).
    lane = lax.broadcasted_iota(jnp.int32, (n_classes, 128), 1)
    slab = (jnp.where(lane == 0, inter, 0.0)
            + jnp.where(lane == 1, zsum, 0.0)
            + jnp.where(lane == 2, cnt, 0.0))
    out_ref[...] = slab


def dice_loss(inputs, target, n_classes, weight=None, softmax=False):
    """Matches DiceLoss.forward: returns scalar loss (mean weighted dice)."""
    B, C, H, W = inputs.shape
    assert C == n_classes, "predict & target shape do not match"
    assert target.shape[0] == B and target.shape[-2:] == (H, W)
    if weight is None:
        weight = [1.0] * n_classes

    n_hw = H * W

    # Keep native floating dtype across the HBM->VMEM DMA (bf16 inputs stay
    # bf16; cast to f32 happens in-kernel after the load).
    if not jnp.issubdtype(inputs.dtype, jnp.floating):
        inputs = inputs.astype(jnp.float32)

    # Native layout (no HBM transpose, no pad): (B, C, H*W) and (B, 1, H*W).
    x = inputs.reshape(B, C, n_hw)
    lab = target.reshape(B, 1, n_hw)
    if lab.dtype != jnp.int32:
        lab = lab.astype(jnp.int32)

    # Tile selection: ~6 MiB combined (activation + label) per grid step,
    # multiple of 128 lanes.  Double-buffered footprint stays < 32 MiB.
    LANE = 128
    target_block_bytes = 6 * 1024 * 1024
    bytes_per_col = C * x.dtype.itemsize + 4          # activations + int32 lab
    tile_n = (target_block_bytes // bytes_per_col) // LANE * LANE
    n_rounded = ((n_hw + LANE - 1) // LANE) * LANE
    tile_n = max(LANE, min(tile_n, n_rounded))
    num_tiles = (n_hw + tile_n - 1) // tile_n
    needs_mask = (num_tiles * tile_n) != n_hw         # ragged last tile

    kernel = functools.partial(
        _dice_partials_kernel,
        n_classes=C,
        softmax=bool(softmax),
        n_valid=n_hw,
        tile_n=tile_n,
        needs_mask=needs_mask,
    )

    partials = pl.pallas_call(
        kernel,
        out_shape=jax.ShapeDtypeStruct((B, num_tiles, C, 128), jnp.float32),
        grid_spec=pltpu.PrefetchScalarGridSpec(
            num_scalar_prefetch=0,
            grid=(B, num_tiles),
            in_specs=[
                pl.BlockSpec((None, C, tile_n), lambda b, t: (b, 0, t)),
                pl.BlockSpec((None, 1, tile_n), lambda b, t: (b, 0, t)),
            ],
            out_specs=pl.BlockSpec((None, None, C, 128),
                                   lambda b, t: (b, t, 0, 0)),
        ),
        compiler_params=pltpu.CompilerParams(
            # Tiles are independent -> shard across both TCs on v7x.
            dimension_semantics=("parallel", "parallel"),
            vmem_limit_bytes=32 * 1024 * 1024,
        ),
    )(x, lab)

    # Tiny finalize in the wrapper (keeps the scalar divides and the
    # scalar-output constraint out of the kernel, enabling the parallel grid).
    totals = jnp.sum(partials, axis=(0, 1))          # (C, 128)
    inter = totals[:, 0]
    zsum = totals[:, 1]
    cnt = totals[:, 2]                               # == y_sum since t*t == t
    smooth = jnp.float32(1e-05)
    dice = 1.0 - (2.0 * inter + smooth) / (zsum + cnt + smooth)
    w = jnp.asarray(weight, dtype=jnp.float32)
    return jnp.sum(dice * w) / jnp.float32(n_classes)


def _dice_loss_ref(inputs, target, n_classes, weight=None, softmax=False):
    """Pure-JAX reference replicating the PyTorch module semantics."""
    if softmax:
        inputs = jax.nn.softmax(inputs.astype(jnp.float32), axis=1)
    else:
        inputs = inputs.astype(jnp.float32)
    if weight is None:
        weight = [1.0] * n_classes
    onehot = jnp.concatenate(
        [(target == i).astype(jnp.float32) for i in range(n_classes)], axis=1)
    smooth = 1e-05
    loss = 0.0
    for i in range(n_classes):
        score = inputs[:, i]
        t = onehot[:, i]
        intersect = jnp.sum(score * t)
        y_sum = jnp.sum(t * t)
        z_sum = jnp.sum(score * score)
        dice = 1.0 - (2.0 * intersect + smooth) / (z_sum + y_sum + smooth)
        loss = loss + dice * weight[i]
    return loss / n_classes


if __name__ == "__main__":
    B, C, H, W = 2, 4, 16, 16
    key = jax.random.PRNGKey(0)
    k1, k2 = jax.random.split(key)

    logits = jax.random.normal(k1, (B, C, H, W), dtype=jnp.float32)
    labels = jax.random.randint(k2, (B, 1, H, W), 0, C, dtype=jnp.int32)

    # Softmax path (in-kernel softmax uses the EUP approx reciprocal ->
    # slightly looser tolerance vs. the exact-divide reference).
    loss = dice_loss(logits, labels, n_classes=C, softmax=True)
    loss = jax.block_until_ready(loss)
    ref = _dice_loss_ref(logits, labels, n_classes=C, softmax=True)
    assert jnp.allclose(loss, ref, atol=2e-3, rtol=2e-3), (loss, ref)

    # Probability-input path with class weights (no approx ops -> tight tol).
    probs = jax.nn.softmax(logits, axis=1)
    wts = [0.5, 1.0, 1.5, 2.0]
    loss2 = dice_loss(probs, labels, n_classes=C, weight=wts, softmax=False)
    loss2 = jax.block_until_ready(loss2)
    ref2 = _dice_loss_ref(probs, labels, n_classes=C, weight=wts, softmax=False)
    assert jnp.allclose(loss2, ref2, atol=1e-5, rtol=1e-5), (loss2, ref2)

    # Ragged-tail path: spatial size not a multiple of the 128-lane tile ->
    # exercises the in-kernel tail masking (no wrapper pad anymore).
    H2, W2 = 13, 11
    logits3 = jax.random.normal(k1, (B, C, H2, W2), dtype=jnp.float32)
    labels3 = jax.random.randint(k2, (B, 1, H2, W2), 0, C, dtype=jnp.int32)
    loss3 = dice_loss(logits3, labels3, n_classes=C, softmax=True)
    loss3 = jax.block_until_ready(loss3)
    ref3 = _dice_loss_ref(logits3, labels3, n_classes=C, softmax=True)
    assert jnp.allclose(loss3, ref3, atol=2e-3, rtol=2e-3), (loss3, ref3)

    print("KERNEL_OK")
</pallas_src>

<mosaic_0001>
module attributes {stable_mosaic.version = 11 : i64} {
  func.func @_dice_partials_kernel(%arg0: i32, %arg1: i32, %arg2: memref<1x4x256xf32, #tpu.memory_space<vmem>>, %arg3: memref<1x1x256xi32, #tpu.memory_space<vmem>>, %arg4: memref<1x1x4x128xf32, #tpu.memory_space<vmem>>) attributes {dimension_semantics = [#tpu.dimension_semantics<parallel>, #tpu.dimension_semantics<parallel>], iteration_bounds = array<i64: 2, 1>, scalar_prefetch = 0 : i64, scratch_operands = 0 : i64, tpu.core_type = #tpu.core_type<tc>, window_params = [{transform_indices = @transform_0, window_bounds = array<i64: 1, 4, 256>}, {transform_indices = @transform_1, window_bounds = array<i64: 1, 1, 256>}, {transform_indices = @transform_2, window_bounds = array<i64: 1, 1, 4, 128>}]} {
    %c0 = arith.constant 0 : index
    %c0_0 = arith.constant 0 : index
    %c0_1 = arith.constant 0 : index
    %0 = vector.load %arg2[%c0, %c0_0, %c0_1] : memref<1x4x256xf32, #tpu.memory_space<vmem>>, vector<1x4x256xf32>
    %1 = vector.shape_cast %0 : vector<1x4x256xf32> to vector<4x256xf32>
    %c0_2 = arith.constant 0 : index
    %c0_3 = arith.constant 0 : index
    %c0_4 = arith.constant 0 : index
    %2 = vector.load %arg3[%c0_2, %c0_3, %c0_4] : memref<1x1x256xi32, #tpu.memory_space<vmem>>, vector<1x1x256xi32>
    %3 = vector.shape_cast %2 : vector<1x1x256xi32> to vector<1x256xi32>
    %cst = arith.constant dense<0xFF800000> : vector<256xf32>
    %4 = vector.multi_reduction <maximumf>, %1, %cst [0] : vector<4x256xf32> to vector<256xf32>
    %5 = vector.shape_cast %4 : vector<256xf32> to vector<1x256xf32>
    %6 = vector.broadcast %5 : vector<1x256xf32> to vector<4x256xf32>
    %7 = arith.subf %1, %6 : vector<4x256xf32>
    %8 = math.exp %7 : vector<4x256xf32>
    %cst_5 = arith.constant dense<0.000000e+00> : vector<256xf32>
    %9 = vector.multi_reduction <add>, %8, %cst_5 [0] : vector<4x256xf32> to vector<256xf32>
    %10 = vector.shape_cast %9 : vector<256xf32> to vector<1x256xf32>
    %11 = tpu.reciprocal %10 {approx = true} : vector<1x256xf32> -> vector<1x256xf32>
    %12 = vector.broadcast %11 : vector<1x256xf32> to vector<4x256xf32>
    %13 = arith.mulf %8, %12 : vector<4x256xf32>
    %14 = tpu.iota {dimensions = array<i32: 0>} : vector<4x1xi32>
    %15 = vector.broadcast %3 : vector<1x256xi32> to vector<4x256xi32>
    %16 = vector.broadcast %14 : vector<4x1xi32> to vector<4x256xi32>
    %17 = arith.cmpi eq, %15, %16 : vector<4x256xi32>
    %cst_6 = arith.constant 0.000000e+00 : f32
    %18 = vector.broadcast %cst_6 : f32 to vector<4x256xf32>
    %19 = arith.select %17, %13, %18 : vector<4x256xi1>, vector<4x256xf32>
    %cst_7 = arith.constant dense<0.000000e+00> : vector<4xf32>
    %20 = vector.multi_reduction <add>, %19, %cst_7 [1] : vector<4x256xf32> to vector<4xf32>
    %21 = vector.shape_cast %20 : vector<4xf32> to vector<4x1xf32>
    %22 = arith.mulf %13, %13 : vector<4x256xf32>
    %cst_8 = arith.constant dense<0.000000e+00> : vector<4xf32>
    %23 = vector.multi_reduction <add>, %22, %cst_8 [1] : vector<4x256xf32> to vector<4xf32>
    %24 = vector.shape_cast %23 : vector<4xf32> to vector<4x1xf32>
    %25 = arith.extui %17 : vector<4x256xi1> to vector<4x256xi32>
    %26 = arith.sitofp %25 : vector<4x256xi32> to vector<4x256xf32>
    %cst_9 = arith.constant dense<0.000000e+00> : vector<4xf32>
    %27 = vector.multi_reduction <add>, %26, %cst_9 [1] : vector<4x256xf32> to vector<4xf32>
    %28 = vector.shape_cast %27 : vector<4xf32> to vector<4x1xf32>
    %29 = tpu.iota {dimensions = array<i32: 1>} : vector<4x128xi32>
    %c0_i32 = arith.constant 0 : i32
    %30 = vector.broadcast %c0_i32 : i32 to vector<4x128xi32>
    %31 = arith.cmpi eq, %29, %30 : vector<4x128xi32>
    %cst_10 = arith.constant 0.000000e+00 : f32
    %32 = vector.shape_cast %21 : vector<4x1xf32> to vector<4x1xf32>
    %33 = vector.broadcast %32 : vector<4x1xf32> to vector<4x128xf32>
    %34 = vector.broadcast %cst_10 : f32 to vector<4x128xf32>
    %35 = arith.select %31, %33, %34 : vector<4x128xi1>, vector<4x128xf32>
    %c1_i32 = arith.constant 1 : i32
    %36 = vector.broadcast %c1_i32 : i32 to vector<4x128xi32>
    %37 = arith.cmpi eq, %29, %36 : vector<4x128xi32>
    %cst_11 = arith.constant 0.000000e+00 : f32
    %38 = vector.shape_cast %24 : vector<4x1xf32> to vector<4x1xf32>
    %39 = vector.broadcast %38 : vector<4x1xf32> to vector<4x128xf32>
    %40 = vector.broadcast %cst_11 : f32 to vector<4x128xf32>
    %41 = arith.select %37, %39, %40 : vector<4x128xi1>, vector<4x128xf32>
    %42 = arith.addf %35, %41 : vector<4x128xf32>
    %c2_i32 = arith.constant 2 : i32
    %43 = vector.broadcast %c2_i32 : i32 to vector<4x128xi32>
    %44 = arith.cmpi eq, %29, %43 : vector<4x128xi32>
    %cst_12 = arith.constant 0.000000e+00 : f32
    %45 = vector.shape_cast %28 : vector<4x1xf32> to vector<4x1xf32>
    %46 = vector.broadcast %45 : vector<4x1xf32> to vector<4x128xf32>
    %47 = vector.broadcast %cst_12 : f32 to vector<4x128xf32>
    %48 = arith.select %44, %46, %47 : vector<4x128xi1>, vector<4x128xf32>
    %49 = arith.addf %42, %48 : vector<4x128xf32>
    %c0_13 = arith.constant 0 : index
    %c0_14 = arith.constant 0 : index
    %c0_15 = arith.constant 0 : index
    %c0_16 = arith.constant 0 : index
    %50 = vector.load %arg4[%c0_13, %c0_14, %c0_15, %c0_16] : memref<1x1x4x128xf32, #tpu.memory_space<vmem>>, vector<1x1x4x128xf32>
    %51 = vector.shape_cast %50 : vector<1x1x4x128xf32> to vector<4x128xf32>
    %52 = vector.shape_cast %49 : vector<4x128xf32> to vector<1x1x4x128xf32>
    tpu.vector_store %arg4[%c0_13, %c0_14, %c0_15, %c0_16], %52 {strides = array<i32>} : memref<1x1x4x128xf32, #tpu.memory_space<vmem>>, vector<1x1x4x128xf32>,
    return
  }
  func.func @transform_0(%arg0: i32, %arg1: i32) -> (i32, i32, i32) {
    %c0_i32 = arith.constant 0 : i32
    %c0_i32_0 = arith.constant 0 : i32
    return %arg0, %c0_i32, %arg1 : i32, i32, i32
  }
  func.func @transform_1(%arg0: i32, %arg1: i32) -> (i32, i32, i32) {
    %c0_i32 = arith.constant 0 : i32
    %c0_i32_0 = arith.constant 0 : i32
    return %arg0, %c0_i32, %arg1 : i32, i32, i32
  }
  func.func @transform_2(%arg0: i32, %arg1: i32) -> (i32, i32, i32, i32) {
    %c0_i32 = arith.constant 0 : i32
    %c0_i32_0 = arith.constant 0 : i32
    %c0_i32_1 = arith.constant 0 : i32
    return %arg0, %arg1, %c0_i32, %c0_i32_0 : i32, i32, i32, i32
  }
}

</mosaic_0001>

<bundles_post_ra>
// kernel: tpu_custom_call.1
= control target key start
LH: loop header
LB: loop body
LE: loop exit
PB: predicated region body
PF: predicated region fallthrough
CT: control target
= control target key end

     0   :  { %7 = vsyncpa [#allocation3], 0  ;;  %s887_s0 = inlined_call_operand.hbm [shape: f32[2,4,256], index: 0, kind: input, shape index: {}]   ;;  %s888_s1 = inlined_call_operand.hbm [shape: s32[2,1,256], index: 1, kind: input, shape index: {}]   ;;  %s889_s2 = inlined_call_operand.hbm [shape: f32[2,1,4,128], index: 2, kind: output, shape index: {}]  }
   0x1   :  { %9 = vsyncpa [#allocation3 + $0x1], 0 }
   0x2   :  { %10 = vsyncpa [#allocation6], 0 }
   0x3   :  { %12 = vsyncpa [#allocation6 + $0x1], 0 }
   0x4   :  { %13 = vsyncpa [#allocation4], 0 }
   0x5   :  { %15 = vsyncpa [#allocation4 + $0x1], 0  ;;  %s717_s9 = smov 0   ;;  %s719_s10 = smov 0  }
   0x6   :  { %s721_s11 = smov 0   ;;  %s723_s12 = smov 0  }
   0x7   :  { %s725_s13 = smov 0   ;;  %s727_s14 = smov 0  }
   0x8 LB: > { %s459_s15 = sadd.s32 4294967295, %s699_s14   ;;  %s460_s16 = sadd.s32 4294967294, %s699_s14   ;;  %s699_s14 = sphi %s727_s14, %s21_s14   ;;  %s695_s13 = sphi %s725_s13, %s903_s13   ;;  %s691_s12 = sphi %s723_s12, %s902_s12   ;;  %s687_s11 = sphi %s721_s11, %s901_s11   ;;  %s683_s10 = sphi %s719_s10, %s900_s10   ;;  %s679_s9 = sphi %s717_s9, %s899_s9  }
   0x9   : > { %s33_s17 = sadd.s32 1, %s695_s13  ;;  %s42_s18 = sadd.s32 1, %s687_s11 }
   0xa   : > { %p35_p0 = scmp.ge.s32.totalorder %s33_s17, 2  ;;  %p49_p1 = scmp.ne.s32.totalorder %s687_s11, %s683_s10 }
   0xb   : > { %p50_p2 = scmp.eq.s32.totalorder %s699_s14, 0  ;;  %p55_p3 = scmp.ne.s32.totalorder %s683_s10, %s679_s9 }
   0xc   : > { %s905_s17 = smov (%p35_p0, %s33_s17), 0  ;;  %p56_p5 = scmp.eq.s32.totalorder %s459_s15, 0 }
   0xd   : > { %p758_p4 = por %p50_p2, %p49_p1  ;;  %s37_s20 = ssub.s32 %s695_s13, %s905_s17 }
   0xe   : > { %p109_p6 = scmp.eq.s32.totalorder %s459_s15, 1  ;;  %p40_p7 = scmp.eq.s32.totalorder %s37_s20, 0 }
   0xf   : > { %p764_p8 = por %p56_p5, %p55_p3  ;;  %p115_p10 = scmp.eq.s32.totalorder %s460_s16, 1 }
  0x10   : > { %p768_p9 = por %p109_p6, %p49_p1  ;;  %p462_p12 = scmp.ge.s32.totalorder %s699_s14, 2 }
  0x11   : > { %s773_s23 = scalar_select %p40_p7, %s687_s11, %s42_s18  }
  0x12   : > { %p775_p11 = por %p115_p10, %p55_p3  ;;  %p496_p13 = scmp.lt.s32.totalorder %s699_s14, 2 }
  0x13   : > { %s135_s25 = sand.u32 1, %s687_s11   ;;  %s478_s27 = sshll.u32 %s695_s13, 3 }
  0x14   : > { %s463_s26 = sshll.u32 %s135_s25, 3  ;;  %s146_s30 = scalar_lea.hbm %s887_s0, %s478_s27 }
  0x15   : > { %s139_s3 = scalar_lea.vmem [#allocation2], %s463_s26  ;;  %s148_s5 = sshll.u32 %s146_s30, 4  ;;  %s149_s5 = int_to_ptr.hbm [resolvable:$true] %s148_s5 }
  0x16   : > { %s150_s4 = sshll.u32 %s139_s3, 4  ;;  %p788_p0 = pnand %p496_p13, %p758_p4  ;;  %s151_s4 = int_to_ptr.vmem [resolvable:$true] %s150_s4 }
  0x17   : > { %p468_p1 = scmp.ge.s32.totalorder %s699_s14, 1  ;;  %p176_p2 = scmp.lt.s32.totalorder %s699_s14, 3 }
  0x18   : > { %s136_s7 = scalar_lea.sflag [#allocation3], %s135_s25  ;;  %s466_s8 = sshll.u32 %s135_s25, 1 }
  0x19   : > { %488 = dma.hbm_to_vmem [thread:$0]  (!%p788_p0), %s149_s5, 128, %s151_s4, %s136_s7  }
  0x1a   : > { %p177_p3 = pnand %p468_p1, %p176_p2  ;;  %s467_s15 = sshll.u32 %s695_s13, 1 }
  0x1b   : > { %s167_s20 = scalar_lea.hbm %s888_s1, %s467_s15  ;;  %s161_s26 = scalar_lea.vmem [#allocation5], %s466_s8 }
  0x1c   : > { %s171_s19 = sshll.u32 %s161_s26, 4  ;;  %s169_s27 = sshll.u32 %s167_s20, 4  ;;  %s172_s19 = int_to_ptr.vmem [resolvable:$true] %s171_s19  ;;  %s170_s27 = int_to_ptr.hbm [resolvable:$true] %s169_s27 }
  0x1d   : > { %s158_s28 = scalar_lea.sflag [#allocation6], %s135_s25  ;;  %180 = sbr.rel (%p177_p3) target bundleno = 252 (0xfc), region = 28 }
  0x1e   : > { %491 = dma.hbm_to_vmem [thread:$0]  (!%p788_p0), %s170_s27, 32, %s172_s19, %s158_s28  }
  0x1f   : > { %s803_s29 = sand.u32 (!%p177_p3), 1, %s683_s10  }
  0x20   : > { %s469_s30 = sshll.u32 (!%p177_p3), %s803_s29, 3  ;;  %s183_s3 = scalar_lea.sflag (!%p177_p3), [#allocation3], %s803_s29 }
  0x21   : > { %s186_s4 = scalar_lea.vmem (!%p177_p3), [#allocation2], %s469_s30 }
  0x22   : > { %666 = dma.done.wait (%p764_p8), %s183_s3, 128  }
  0x23   : > { %668 = vsyncadd (%p764_p8), %s183_s3, 4294967168  ;;  %s470_s25 = sshll.u32 %s803_s29, 1  ;;  %s193_s5 = scalar_lea.sflag [#allocation6], %s803_s29 }
  0x24   : > { %s813_s6 = scalar_lea.vmem [#allocation5], %s470_s25 }
  0x25   : > { %670 = dma.done.wait (%p764_p8), %s193_s5, 32  }
  0x26   : > { %672 = vsyncadd (%p764_p8), %s193_s5, 4294967264  ;;  %v225_v0 = vld [vmem:[%s186_s4] sm:$0xff]  ;;  %vm233_vm0 = vcmask 1043456   ;;  %v284_v28 = vlaneseq  ;;  %v226_v29 = vld [vmem:[%s813_s6] sm:$0x3]  ;;  %v701_v45 = vmov 0.0  }
  0x27   : > { %228 = vst [vmem:[#allocation1] ss:$2 sm:$0xff] %v225_v0  ;;  %v286_v35 = vperm.slane %v226_v29, 0  ;;  %v287_v38 = vperm.slane %v226_v29, 1  ;;  %s471_s21 = sshll.u32 %s803_s29, 2  ;;  %s475_s7 = sshll.u32 %s691_s12, 2 }
  0x28   : > { %v285_v34 = vshrl.u32 %v284_v28, 7  ;;  %s347_s16 = scalar_lea.hbm %s889_s2, %s475_s7  ;;  %s222_s18 = scalar_lea.vmem [#allocation7], %s471_s21 }
  0x29   : > { %s349_s20 = sshll.u32 %s222_s18, 4  ;;  %s351_s26 = sshll.u32 %s347_s16, 4  ;;  %s350_s20 = int_to_ptr.vmem [resolvable:$true] %s349_s20  ;;  %s352_s26 = int_to_ptr.hbm [resolvable:$true] %s351_s26 }
  0x2a   : > { %vm825_vm1 = vcmp.eq.s32.totalorder %v286_v35, %v285_v34  ;;  %vm829_vm2 = vcmp.eq.s32.totalorder %v287_v38, %v285_v34  ;;  %s336_s12 = scalar_lea.sflag [#allocation4], %s803_s29  ;;  %s627_s19 = sshra.s32 %s352_s26, 4  ;;  %s628_s19 = int_to_ptr.hbm [resolvable:$true] %s627_s19 }
  0x2b   : > { %v472_v46 = vsel %vm825_vm1, 1.0, %v701_v45  ;;  %v473_v47 = vsel %vm829_vm2, 1.0, %v701_v45  ;;  %s629_s27 = scalar_lea.hbm %s628_s19, 4  ;;  %s633_s3 = scalar_lea.hbm %s889_s2, 8 }
  0x2c   : > { %v319_v48 = vsel %vm233_vm0, %v472_v46, 0.0  ;;  %v320_v49 = vsel %vm233_vm0, %v473_v47, 0.0  ;;  %p630_p4 = scmp.ne.s32.totalorder %s628_s19, %s629_s27  ;;  %p634_p7 = scmp.lt.s32.totalorder %s628_s19, %s889_s2 }
  0x2d   : > { %v321_v50 = vadd.f32 %v320_v49, %v319_v48  ;;  %p635_p8 = scmp.lt.s32.totalorder %s633_s3, %s629_s27 }
  0x2e   : > { %v229_v1 = vld.sshfl [vmem:[#allocation1] sm:$0xff pattern:$0x75316420]  ;;  %v230_v2 = vld.sshfl [vmem:[#allocation1 + $0x8] sm:$0xff pattern:$0x75316420]  ;;  %p631_p5 = pnand %p630_p4, %p768_p9 }
  0x2f   : > { %v234_v3 = vsel %vm233_vm0, %v229_v1, -inf  ;;  %v241_v4 = vsel %vm233_vm0, %v230_v2, -inf  ;;  %322 = vadd.xlane.f32.xlu1 %v321_v50  ;;  %p636_p10 = por %p635_p8, %p634_p7 }
  0x30   : > { %v235_v5 = vrot.slane %v234_v3, 4  ;;  %v242_v6 = vrot.slane %v241_v4, 4  ;;  %p632_p6 = pneg %p631_p5 }
  0x32   : > { %v236_v7 = vmax.f32 %v234_v3, %v235_v5  ;;  %v243_v8 = vmax.f32 %v241_v4, %v242_v6  ;;  %v325_v6 = vand.u32 127, %v284_v28  ;;  %p637_p13 = pnand %p636_p10, %p632_p6 }
  0x34   : > { %v237_v9 = vrot.slane %v236_v7, 2  ;;  %v244_v10 = vrot.slane %v243_v8, 2  ;;  %vm326_vm3 = vcmp.eq.s32.totalorder %v325_v6, 0  ;;  %vm328_vm4 = vcmp.eq.s32.totalorder %v325_v6, 1 }
  0x35   : > { %vm331_vm5 = vcmp.eq.s32.totalorder %v325_v6, 2 }
  0x36   : > { %v238_v11 = vmax.f32 %v236_v7, %v237_v9  ;;  %v245_v12 = vmax.f32 %v243_v8, %v244_v10 }
  0x38   : > { %v239_v13 = vrot.slane %v238_v11, 1  ;;  %v246_v14 = vrot.slane %v245_v12, 1 }
  0x3a   : > { %v240_v15 = vmax.f32 %v238_v11, %v239_v13  ;;  %v247_v16 = vmax.f32 %v245_v12, %v246_v14 }
  0x3c   : > { %v250_v17 = vrot.slane %v247_v16, 4 }
  0x3e   : > { %v251_v18 = vsel %vm233_vm0, %v240_v15, %v250_v17 }
  0x3f   : > { %v253_v19 = vsub.f32 %v225_v0, %v251_v18 }
  0x41   : > { %v254_v20 = vmul.f32 1.442695, %v253_v19 }
  0x43   : > { %547 = vpow2.f32 %v254_v20 }
  0x49   : > { %v548_v21 = vpop.eup %547 }
  0x4a   : > { %257 = vst [vmem:[#allocation1] ss:$2 sm:$0xff] %v548_v21 }
  0x51   : > { %v258_v22 = vld.sshfl [vmem:[#allocation1] sm:$0xff pattern:$0x75316420]  ;;  %v259_v23 = vld.sshfl [vmem:[#allocation1 + $0x8] sm:$0xff pattern:$0x75316420] }
  0x52   : > { %v262_v24 = vsel %vm233_vm0, %v258_v22, 0.0  ;;  %v269_v25 = vsel %vm233_vm0, %v259_v23, 0.0 }
  0x53   : > { %v263_v26 = vrot.slane %v262_v24, 4  ;;  %v270_v27 = vrot.slane %v269_v25, 4 }
  0x55   : > { %v264_v30 = vadd.f32 %v263_v26, %v262_v24  ;;  %v271_v31 = vadd.f32 %v270_v27, %v269_v25 }
  0x57   : > { %v265_v32 = vrot.slane %v264_v30, 2  ;;  %v272_v33 = vrot.slane %v271_v31, 2 }
  0x59   : > { %v266_v36 = vadd.f32 %v265_v32, %v264_v30  ;;  %v273_v37 = vadd.f32 %v272_v33, %v271_v31 }
  0x5b   : > { %v267_v39 = vrot.slane %v266_v36, 1  ;;  %v274_v40 = vrot.slane %v273_v37, 1 }
  0x5d   : > { %v268_v42 = vadd.f32 %v267_v39, %v266_v36  ;;  %v275_v43 = vadd.f32 %v274_v40, %v273_v37 }
  0x5f   : > { %549 = vrcp.f32 %v268_v42 }
  0x60   : > { %551 = vrcp.f32 %v275_v43 }
  0x65   : > { %v550_v51 = vpop.eup %549 }
  0x66   : > { %v552_v52 = vpop.eup %551 }
  0x67   : > { %v280_v53 = vrot.slane %v552_v52, 4 }
  0x69   : > { %v281_v54 = vsel %vm233_vm0, %v550_v51, %v280_v53 }
  0x6a   : > { %v283_v55 = vmul.f32 %v548_v21, %v281_v54 }
  0x6c   : > { %291 = vst [vmem:[#allocation1] ss:$2 sm:$0xff] %v283_v55  ;;  %v303_v56 = vmul.f32 %v283_v55, %v283_v55 }
  0x73   : > { %v292_v57 = vld.sshfl [vmem:[#allocation1] sm:$0xff pattern:$0x75316420]  ;;  %v293_v58 = vld.sshfl [vmem:[#allocation1 + $0x8] sm:$0xff pattern:$0x75316420] }
  0x74   : > { %v296_v59 = vsel %vm825_vm1, %v292_v57, 0.0  ;;  %v297_v60 = vsel %vm829_vm2, %v293_v58, 0.0  ;;  %305 = vst [vmem:[#allocation1] ss:$2 sm:$0xff] %v303_v56 }
  0x75   : > { %v298_v61 = vsel %vm233_vm0, %v296_v59, 0.0  ;;  %v299_v62 = vsel %vm233_vm0, %v297_v60, 0.0 }
  0x76   : > { %v300_v63 = vadd.f32 %v299_v62, %v298_v61 }
  0x78   : > { %301 = vadd.xlane.f32.xlu0 %v300_v63 }
  0x7b   : > { %v306_v0 = vld.sshfl [vmem:[#allocation1] sm:$0xff pattern:$0x75316420]  ;;  %v307_v1 = vld.sshfl [vmem:[#allocation1 + $0x8] sm:$0xff pattern:$0x75316420] }
  0x7c   : > { %v310_v2 = vsel %vm233_vm0, %v306_v0, 0.0  ;;  %v311_v3 = vsel %vm233_vm0, %v307_v1, 0.0 }
  0x7d   : > { %v312_v4 = vadd.f32 %v311_v3, %v310_v2 }
  0x80   : > { %313 = vadd.xlane.f32.xlu0 %v312_v4 }
  0xa2   : > { %v323_v7 = vpop.xlane.xlu1 %322 }
  0xa3   : > { %v332_v11 = vsel %vm331_vm5, %v323_v7, 0.0 }
  0xeb   : > { %v302_v5 = vpop.xlane.xlu0 %301 }
  0xec   : > { %v327_v9 = vsel %vm326_vm3, %v302_v5, 0.0 }
  0xf3   : > { %v314_v8 = vpop.xlane.xlu0 %313 }
  0xf4   : > { %v329_v10 = vsel %vm328_vm4, %v314_v8, 0.0 }
  0xf5   : > { %v330_v12 = vadd.f32 %v329_v10, %v327_v9 }
  0xf7   : > { %v333_v13 = vadd.f32 %v332_v11, %v330_v12 }
  0xf9   : > { %334 = vst [vmem:[%s222_s18] sm:$0xf] %v333_v13 }
  0xfa   : > { %640 = shalt.err (!%p637_p13)
}
  0xfb   : > { %483 = dma.vmem_to_hbm [thread:$0]  (%p768_p9), %s350_s20, 64, %s352_s26, %s336_s12  }
  0xfc PF: > { %s363_s29 = sand.u32 1, %s679_s9   ;;  %p493_p0 = pnand %p462_p12, %p775_p11 }
  0xfd   : > { %s364_s5 = scalar_lea.sflag [#allocation4], %s363_s29 }
  0xfe   : > { %p494_p1 = pneg %p493_p0 }
 0x100   : > { %674 = dma.done.wait (%p494_p1), %s364_s5, 64  }
 0x101   : > { %676 = vsyncadd (%p494_p1), %s364_s5, 4294967232  ;;  %s21_s14 = sadd.s32 1, %s699_s14   ;;  %s899_s9 = smov %s683_s10 }
 0x102   : > { %p18_p2 = scmp.ge.s32.totalorder %s21_s14, 4   ;;  %s900_s10 = smov %s687_s11 }
 0x103   : > { %s901_s11 = smov %s773_s23  ;;  %s902_s12 = smov %s695_s13 }
 0x104   : > { %s903_s13 = smov %s905_s17  ;;  %20 = sbr.rel (!%p18_p2) target bundleno = 8 (0x8), region = 86 }
 0x109   :  { %370 = vsyncpa [#allocation3], 1 }
 0x10a   :  { %372 = vsyncpa [#allocation3 + $0x1], 1 }
 0x10b   :  { %373 = vsyncpa [#allocation6], 1 }
 0x10c   :  { %375 = vsyncpa [#allocation6 + $0x1], 1 }
 0x10d   :  { %376 = vsyncpa [#allocation4], 1 }
 0x10e   :  { %378 = vsyncpa [#allocation4 + $0x1], 1 }

</bundles_post_ra>
